<compile_context>
chip_gen: v7x
topology: tpu7x:2x2x1
jax: 0.10.0
libtpu: 0.0.40
codegen_flags: <defaults>
</compile_context>

<pallas_src>
import jax
import jax.numpy as jnp
from jax.experimental import pallas as pl
from jax.experimental.pallas import tpu as pltpu


def _round_up(n, m):
    return ((n + m - 1) // m) * m


def _dqn_kernel(x_ref, w1_ref, b1_ref, w2_ref, b2_ref, w3_ref, b3_ref, o_ref):
    # fc1 + ReLU   (bf16 operands, f32 accumulation, f32 bias/ReLU)
    h1 = jnp.dot(x_ref[...], w1_ref[...], preferred_element_type=jnp.float32)
    h1 = jnp.maximum(h1 + b1_ref[...], 0.0)
    # fc2 + ReLU
    h2 = jnp.dot(h1.astype(jnp.bfloat16), w2_ref[...],
                 preferred_element_type=jnp.float32)
    h2 = jnp.maximum(h2 + b2_ref[...], 0.0)
    # out + ReLU (output is lane-padded to 128; padding columns are zeros)
    h3 = jnp.dot(h2.astype(jnp.bfloat16), w3_ref[...],
                 preferred_element_type=jnp.float32)
    o_ref[...] = jnp.maximum(h3 + b3_ref[...], 0.0).astype(o_ref.dtype)


def dqn_forward(x_nchw, params, tm=256):
    """x_nchw: (B, 3, H, W) float32.  Returns (B, 2) float32.

    tm: batch tile (use 128 on v5e to match the 4x128x128 MXU; 256 on v6e/v7x).
    """
    w1, b1, w2, b2, w3, b3 = params
    B = x_nchw.shape[0]
    d_in = x_nchw.shape[1] * x_nchw.shape[2] * x_nchw.shape[3]
    # Flatten exactly like torch .flatten(start_dim=1): (B, C*H*W) row-major.
    x = x_nchw.reshape(B, d_in)

    # Keep K MXU-aligned: zero-pad d_in up to a multiple of 128 (no-op at 768).
    d_pad = _round_up(d_in, 128)
    if d_pad != d_in:
        x = jnp.pad(x, ((0, 0), (0, d_pad - d_in)))
        w1 = jnp.pad(w1, ((0, d_pad - d_in), (0, 0)))

    # Lane-dense output: pad the 2-wide Q head to 128 columns, slice afterwards.
    n_out = w3.shape[1]
    n_pad = _round_up(max(n_out, 128), 128)
    w3p = jnp.pad(w3, ((0, 0), (0, n_pad - n_out)))
    b3p = jnp.pad(b3, ((0, 0), (0, n_pad - n_out)))

    # Batch tiling: clamp the tile for tiny batches, pad B so every tile is full.
    tm = min(tm, _round_up(B, 8))
    b_pad = _round_up(B, tm)
    if b_pad != B:
        x = jnp.pad(x, ((0, b_pad - B), (0, 0)))

    # bf16 operands for the MXU; accumulation stays f32 inside the kernel.
    x_bf = x.astype(jnp.bfloat16)
    w1b = w1.astype(jnp.bfloat16)
    w2b = w2.astype(jnp.bfloat16)
    w3b = w3p.astype(jnp.bfloat16)

    resident = lambda shape: pl.BlockSpec(shape, lambda i: (0, 0))

    out = pl.pallas_call(
        _dqn_kernel,
        out_shape=jax.ShapeDtypeStruct((b_pad, n_pad), jnp.float32),
        grid=(b_pad // tm,),
        in_specs=[
            pl.BlockSpec((tm, d_pad), lambda i: (i, 0)),   # x: tiled over batch
            resident(w1b.shape), resident(b1.shape),       # weights/biases stay
            resident(w2b.shape), resident(b2.shape),       # resident in VMEM
            resident(w3b.shape), resident(b3p.shape),
        ],
        out_specs=pl.BlockSpec((tm, n_pad), lambda i: (i, 0)),
        compiler_params=pltpu.CompilerParams(
            dimension_semantics=("parallel",),
        ),
    )(x_bf, w1b, b1, w2b, b2, w3b, b3p)

    return out[:B, :n_out]


def init_params(key, image_width, image_height):
    """Deterministic init matching nn.Linear default (uniform +/- 1/sqrt(fan_in)).
    Weights stored as (in_features, out_features); biases as (1, out_features)."""
    d_in = image_width * image_height * 3
    dims = [(d_in, 24), (24, 32), (32, 2)]
    params = []
    for (fan_in, fan_out) in dims:
        key, kw, kb = jax.random.split(key, 3)
        bound = 1.0 / (fan_in ** 0.5)
        w = jax.random.uniform(kw, (fan_in, fan_out), jnp.float32, -bound, bound)
        b = jax.random.uniform(kb, (1, fan_out), jnp.float32, -bound, bound)
        params += [w, b]
    return tuple(params)


def _reference(x_nchw, params):
    """Plain-JAX reference using the same bf16-operand / f32-accum recipe."""
    w1, b1, w2, b2, w3, b3 = params
    xf = x_nchw.reshape(x_nchw.shape[0], -1)
    h = jnp.dot(xf.astype(jnp.bfloat16), w1.astype(jnp.bfloat16),
                preferred_element_type=jnp.float32)
    h = jnp.maximum(h + b1, 0.0)
    h = jnp.dot(h.astype(jnp.bfloat16), w2.astype(jnp.bfloat16),
                preferred_element_type=jnp.float32)
    h = jnp.maximum(h + b2, 0.0)
    h = jnp.dot(h.astype(jnp.bfloat16), w3.astype(jnp.bfloat16),
                preferred_element_type=jnp.float32)
    return jnp.maximum(h + b3, 0.0)


def _reference_f32(x_nchw, params):
    w1, b1, w2, b2, w3, b3 = params
    xf = x_nchw.reshape(x_nchw.shape[0], -1)
    h = jnp.maximum(xf @ w1 + b1, 0.0)
    h = jnp.maximum(h @ w2 + b2, 0.0)
    return jnp.maximum(h @ w3 + b3, 0.0)


if __name__ == "__main__":
    key = jax.random.PRNGKey(0)
    image_width, image_height = 16, 16

    k_params, k_x1, k_x2 = jax.random.split(key, 3)
    params = init_params(k_params, image_width, image_height)

    # Small batch (single padded tile, grid=(1,)).
    batch = 2
    x = jax.random.normal(k_x1, (batch, 3, image_height, image_width), jnp.float32)
    out = dqn_forward(x, params)
    jax.block_until_ready(out)
    assert out.shape == (batch, 2)
    assert jnp.allclose(out, _reference(x, params), atol=1e-4, rtol=1e-4)
    assert jnp.allclose(out, _reference_f32(x, params), atol=5e-2, rtol=5e-2)

    # Larger, non-multiple-of-tile batch to exercise the gridded / padded path.
    batch2 = 260
    x2 = jax.random.normal(k_x2, (batch2, 3, image_height, image_width), jnp.float32)
    out2 = dqn_forward(x2, params)
    jax.block_until_ready(out2)
    assert out2.shape == (batch2, 2)
    assert jnp.allclose(out2, _reference(x2, params), atol=1e-4, rtol=1e-4)
    assert jnp.allclose(out2, _reference_f32(x2, params), atol=5e-2, rtol=5e-2)

    print("KERNEL_OK")
</pallas_src>

<mosaic_0001>
module attributes {stable_mosaic.version = 11 : i64} {
  func.func @_dqn_kernel(%arg0: i32, %arg1: memref<8x768xbf16, #tpu.memory_space<vmem>>, %arg2: memref<768x24xbf16, #tpu.memory_space<vmem>>, %arg3: memref<1x24xf32, #tpu.memory_space<vmem>>, %arg4: memref<24x32xbf16, #tpu.memory_space<vmem>>, %arg5: memref<1x32xf32, #tpu.memory_space<vmem>>, %arg6: memref<32x128xbf16, #tpu.memory_space<vmem>>, %arg7: memref<1x128xf32, #tpu.memory_space<vmem>>, %arg8: memref<8x128xf32, #tpu.memory_space<vmem>>) attributes {dimension_semantics = [#tpu.dimension_semantics<parallel>], iteration_bounds = array<i64: 1>, scalar_prefetch = 0 : i64, scratch_operands = 0 : i64, tpu.core_type = #tpu.core_type<tc>, window_params = [{transform_indices = @transform_0, window_bounds = array<i64: 8, 768>}, {pipeline_mode = #tpu.pipeline_mode<synchronous>, transform_indices = @transform_1, window_bounds = array<i64: 768, 24>}, {pipeline_mode = #tpu.pipeline_mode<synchronous>, transform_indices = @transform_2, window_bounds = array<i64: 1, 24>}, {pipeline_mode = #tpu.pipeline_mode<synchronous>, transform_indices = @transform_3, window_bounds = array<i64: 24, 32>}, {pipeline_mode = #tpu.pipeline_mode<synchronous>, transform_indices = @transform_4, window_bounds = array<i64: 1, 32>}, {pipeline_mode = #tpu.pipeline_mode<synchronous>, transform_indices = @transform_5, window_bounds = array<i64: 32, 128>}, {pipeline_mode = #tpu.pipeline_mode<synchronous>, transform_indices = @transform_6, window_bounds = array<i64: 1, 128>}, {transform_indices = @transform_7, window_bounds = array<i64: 8, 128>}]} {
    %c0 = arith.constant 0 : index
    %c0_0 = arith.constant 0 : index
    %0 = vector.load %arg1[%c0, %c0_0] : memref<8x768xbf16, #tpu.memory_space<vmem>>, vector<8x768xbf16>
    %c0_1 = arith.constant 0 : index
    %c0_2 = arith.constant 0 : index
    %1 = vector.load %arg2[%c0_1, %c0_2] : memref<768x24xbf16, #tpu.memory_space<vmem>>, vector<768x24xbf16>
    %cst = arith.constant dense<0.000000e+00> : vector<8x24xf32>
    %2 = tpu.matmul %0, %1, %cst {dimension_numbers = #tpu.dot_dimension_numbers<[1], [0], [0], [1], [0, 0, 1, 1], [], []>} : vector<8x768xbf16>, vector<768x24xbf16>, vector<8x24xf32> -> vector<8x24xf32>
    %c0_3 = arith.constant 0 : index
    %c0_4 = arith.constant 0 : index
    %3 = vector.load %arg3[%c0_3, %c0_4] : memref<1x24xf32, #tpu.memory_space<vmem>>, vector<1x24xf32>
    %4 = vector.broadcast %3 : vector<1x24xf32> to vector<8x24xf32>
    %5 = arith.addf %2, %4 : vector<8x24xf32>
    %cst_5 = arith.constant 0.000000e+00 : f32
    %6 = vector.broadcast %cst_5 : f32 to vector<8x24xf32>
    %7 = arith.maximumf %5, %6 : vector<8x24xf32>
    %8 = arith.truncf %7 : vector<8x24xf32> to vector<8x24xbf16>
    %c0_6 = arith.constant 0 : index
    %c0_7 = arith.constant 0 : index
    %9 = vector.load %arg4[%c0_6, %c0_7] : memref<24x32xbf16, #tpu.memory_space<vmem>>, vector<24x32xbf16>
    %cst_8 = arith.constant dense<0.000000e+00> : vector<8x32xf32>
    %10 = tpu.matmul %8, %9, %cst_8 {dimension_numbers = #tpu.dot_dimension_numbers<[1], [0], [0], [1], [0, 0, 1, 1], [], []>} : vector<8x24xbf16>, vector<24x32xbf16>, vector<8x32xf32> -> vector<8x32xf32>
    %c0_9 = arith.constant 0 : index
    %c0_10 = arith.constant 0 : index
    %11 = vector.load %arg5[%c0_9, %c0_10] : memref<1x32xf32, #tpu.memory_space<vmem>>, vector<1x32xf32>
    %12 = vector.broadcast %11 : vector<1x32xf32> to vector<8x32xf32>
    %13 = arith.addf %10, %12 : vector<8x32xf32>
    %cst_11 = arith.constant 0.000000e+00 : f32
    %14 = vector.broadcast %cst_11 : f32 to vector<8x32xf32>
    %15 = arith.maximumf %13, %14 : vector<8x32xf32>
    %16 = arith.truncf %15 : vector<8x32xf32> to vector<8x32xbf16>
    %c0_12 = arith.constant 0 : index
    %c0_13 = arith.constant 0 : index
    %17 = vector.load %arg6[%c0_12, %c0_13] : memref<32x128xbf16, #tpu.memory_space<vmem>>, vector<32x128xbf16>
    %cst_14 = arith.constant dense<0.000000e+00> : vector<8x128xf32>
    %18 = tpu.matmul %16, %17, %cst_14 {dimension_numbers = #tpu.dot_dimension_numbers<[1], [0], [0], [1], [0, 0, 1, 1], [], []>} : vector<8x32xbf16>, vector<32x128xbf16>, vector<8x128xf32> -> vector<8x128xf32>
    %c0_15 = arith.constant 0 : index
    %c0_16 = arith.constant 0 : index
    %19 = vector.load %arg7[%c0_15, %c0_16] : memref<1x128xf32, #tpu.memory_space<vmem>>, vector<1x128xf32>
    %20 = vector.broadcast %19 : vector<1x128xf32> to vector<8x128xf32>
    %21 = arith.addf %18, %20 : vector<8x128xf32>
    %cst_17 = arith.constant 0.000000e+00 : f32
    %22 = vector.broadcast %cst_17 : f32 to vector<8x128xf32>
    %23 = arith.maximumf %21, %22 : vector<8x128xf32>
    %c0_18 = arith.constant 0 : index
    %c0_19 = arith.constant 0 : index
    %24 = vector.load %arg8[%c0_18, %c0_19] : memref<8x128xf32, #tpu.memory_space<vmem>>, vector<8x128xf32>
    tpu.vector_store %arg8[%c0_18, %c0_19], %23 {strides = array<i32>} : memref<8x128xf32, #tpu.memory_space<vmem>>, vector<8x128xf32>,
    return
  }
  func.func @transform_0(%arg0: i32) -> (i32, i32) {
    %c0_i32 = arith.constant 0 : i32
    %c0_i32_0 = arith.constant 0 : i32
    return %arg0, %c0_i32 : i32, i32
  }
  func.func @transform_1(%arg0: i32) -> (i32, i32) {
    %c0_i32 = arith.constant 0 : i32
    %c0_i32_0 = arith.constant 0 : i32
    %c0_i32_1 = arith.constant 0 : i32
    return %c0_i32, %c0_i32_0 : i32, i32
  }
  func.func @transform_2(%arg0: i32) -> (i32, i32) {
    %c0_i32 = arith.constant 0 : i32
    %c0_i32_0 = arith.constant 0 : i32
    %c0_i32_1 = arith.constant 0 : i32
    return %c0_i32, %c0_i32_0 : i32, i32
  }
  func.func @transform_3(%arg0: i32) -> (i32, i32) {
    %c0_i32 = arith.constant 0 : i32
    %c0_i32_0 = arith.constant 0 : i32
    %c0_i32_1 = arith.constant 0 : i32
    return %c0_i32, %c0_i32_0 : i32, i32
  }
  func.func @transform_4(%arg0: i32) -> (i32, i32) {
    %c0_i32 = arith.constant 0 : i32
    %c0_i32_0 = arith.constant 0 : i32
    %c0_i32_1 = arith.constant 0 : i32
    return %c0_i32, %c0_i32_0 : i32, i32
  }
  func.func @transform_5(%arg0: i32) -> (i32, i32) {
    %c0_i32 = arith.constant 0 : i32
    %c0_i32_0 = arith.constant 0 : i32
    %c0_i32_1 = arith.constant 0 : i32
    return %c0_i32, %c0_i32_0 : i32, i32
  }
  func.func @transform_6(%arg0: i32) -> (i32, i32) {
    %c0_i32 = arith.constant 0 : i32
    %c0_i32_0 = arith.constant 0 : i32
    %c0_i32_1 = arith.constant 0 : i32
    return %c0_i32, %c0_i32_0 : i32, i32
  }
  func.func @transform_7(%arg0: i32) -> (i32, i32) {
    %c0_i32 = arith.constant 0 : i32
    %c0_i32_0 = arith.constant 0 : i32
    return %arg0, %c0_i32 : i32, i32
  }
}

</mosaic_0001>

<bundles_post_ra>
// kernel: tpu_custom_call.1
= control target key start
LH: loop header
LB: loop body
LE: loop exit
PB: predicated region body
PF: predicated region fallthrough
CT: control target
= control target key end

     0   :  { %s1184_s0 = inlined_call_operand.vmem [shape: bf16[8,768], index: 0, kind: input, shape index: {}]   ;;  %s1185_s1 = inlined_call_operand.vmem [shape: bf16[768,24], index: 1, kind: input, shape index: {}]   ;;  %s1186_s2 = inlined_call_operand.vmem [shape: f32[1,24], index: 2, kind: input, shape index: {}]   ;;  %s1187_s3 = inlined_call_operand.vmem [shape: bf16[24,32], index: 3, kind: input, shape index: {}]   ;;  %s1188_s4 = inlined_call_operand.vmem [shape: f32[1,32], index: 4, kind: input, shape index: {}]   ;;  %s1189_s5 = inlined_call_operand.vmem [shape: bf16[32,128], index: 5, kind: input, shape index: {}]   ;;  %s1190_s6 = inlined_call_operand.vmem [shape: f32[1,128], index: 6, kind: input, shape index: {}]   ;;  %s1191_s7 = inlined_call_operand.hbm [shape: f32[8,128], index: 7, kind: output, shape index: {}]  }
   0x1   :  { %v871_v0 = vld [vmem:[%s1185_s1 + $0x40] sm:$0xff]   ;;  %v875_v4 = vld [vmem:[%s1185_s1 + $0x48] sm:$0xff]   ;;  %v879_v8 = vld [vmem:[%s1185_s1 + $0x50] sm:$0xff]  }
   0x2   :  { %v872_v1 = vld [vmem:[%s1185_s1] sm:$0xff]   ;;  %780 = vmatprep.subr.bf16.mxu0 %v871_v0  ;;  %v876_v5 = vld [vmem:[%s1185_s1 + $0x8] sm:$0xff]   ;;  %v880_v9 = vld [vmem:[%s1185_s1 + $0x10] sm:$0xff]  }
   0x3   :  { %v873_v2 = vld [vmem:[%s1185_s1 + $0xc0] sm:$0xff]   ;;  %781 = vmatpush3.bf16.msra.mxu0 %v872_v1  ;;  %v877_v6 = vld [vmem:[%s1185_s1 + $0xc8] sm:$0xff]   ;;  %v881_v10 = vld [vmem:[%s1185_s1 + $0xd0] sm:$0xff]  }
   0x4   :  { %v874_v3 = vld [vmem:[%s1185_s1 + $0x80] sm:$0xff]   ;;  %802 = vmatprep.subr.bf16.mxu1 %v873_v2  ;;  %782 = vmatprep.subr.bf16.mxu0 %v875_v4  ;;  %v878_v7 = vld [vmem:[%s1185_s1 + $0x88] sm:$0xff]   ;;  %v882_v11 = vld [vmem:[%s1185_s1 + $0x90] sm:$0xff]  }
   0x5   :  { %803 = vmatpush3.bf16.msra.mxu1 %v874_v3  ;;  %v883_v12 = vld [vmem:[%s1185_s1 + $0x58] sm:$0xff]   ;;  %v887_v16 = vld [vmem:[%s1185_s1 + $0x60] sm:$0xff]   ;;  %v891_v20 = vld [vmem:[%s1185_s1 + $0x68] sm:$0xff]  }
   0x6   :  { %804 = vmatprep.subr.bf16.mxu1 %v877_v6  ;;  %v884_v13 = vld [vmem:[%s1185_s1 + $0x18] sm:$0xff]   ;;  %v888_v17 = vld [vmem:[%s1185_s1 + $0x20] sm:$0xff]   ;;  %v892_v21 = vld [vmem:[%s1185_s1 + $0x28] sm:$0xff]  }
   0x7   :  { %783 = vmatpush3.bf16.msra.mxu0 %v876_v5  ;;  %v885_v14 = vld [vmem:[%s1185_s1 + $0xd8] sm:$0xff]   ;;  %v889_v18 = vld [vmem:[%s1185_s1 + $0xe0] sm:$0xff]   ;;  %v893_v22 = vld [vmem:[%s1185_s1 + $0xe8] sm:$0xff]  }
   0x8   :  { %784 = vmatprep.subr.bf16.mxu0 %v879_v8  ;;  %v886_v15 = vld [vmem:[%s1185_s1 + $0x98] sm:$0xff]   ;;  %v890_v19 = vld [vmem:[%s1185_s1 + $0xa0] sm:$0xff]   ;;  %v894_v23 = vld [vmem:[%s1185_s1 + $0xa8] sm:$0xff]  }
   0x9   :  { %805 = vmatpush3.bf16.msra.mxu1 %v878_v7  ;;  %v895_v24 = vld [vmem:[%s1185_s1 + $0x70] sm:$0xff]   ;;  %v899_v28 = vld [vmem:[%s1185_s1 + $0x78] sm:$0xff]   ;;  %v28_v31 = vld [vmem:[%s1184_s0] sm:$0xff] }
   0xa   :  { %806 = vmatprep.subr.bf16.mxu1 %v881_v10  ;;  %v896_v25 = vld [vmem:[%s1185_s1 + $0x30] sm:$0xff]   ;;  %v900_v29 = vld [vmem:[%s1185_s1 + $0x38] sm:$0xff]   ;;  %v718_v32 = vcombine.low %v28_v31, %v28_v31  ;;  %v719_v33 = vcombine.high %v28_v31, %v28_v31  ;;  %v905_v35 = vld [vmem:[%s1185_s1 + $0x140] sm:$0xff]  }
   0xb   :  { %785 = vmatpush3.bf16.msra.mxu0 %v880_v9  ;;  %v897_v26 = vld [vmem:[%s1185_s1 + $0xf0] sm:$0xff]   ;;  %v901_v30 = vld [vmem:[%s1185_s1 + $0xf8] sm:$0xff]   ;;  %v29_v36 = vld [vmem:[%s1184_s0 + $0x8] sm:$0xff] }
   0xc   :  { %786 = vmatprep.subr.bf16.mxu0 %v883_v12  ;;  %v898_v27 = vld [vmem:[%s1185_s1 + $0xb0] sm:$0xff]   ;;  %v904_v34 = vld [vmem:[%s1185_s1 + $0xb8] sm:$0xff]   ;;  %475 = vmatprep.mubr.bf16.mxu0 %v719_v33  ;;  %v720_v37 = vcombine.low %v29_v36, %v29_v36  ;;  %v721_v38 = vcombine.high %v29_v36, %v29_v36  ;;  %v908_v39 = vld [vmem:[%s1185_s1 + $0x100] sm:$0xff]  }
   0xd   :  { %807 = vmatpush3.bf16.msra.mxu1 %v882_v11  ;;  %v909_v40 = vld [vmem:[%s1185_s1 + $0x148] sm:$0xff]   ;;  %v911_v42 = vld [vmem:[%s1185_s1 + $0x150] sm:$0xff]   ;;  %v913_v44 = vld [vmem:[%s1185_s1 + $0x158] sm:$0xff]  }
   0xe   :  { %808 = vmatprep.subr.bf16.mxu1 %v885_v14  ;;  %515 = vmatprep.mubr.bf16.mxu1 %v721_v38  ;;  %v910_v41 = vld [vmem:[%s1185_s1 + $0x108] sm:$0xff]   ;;  %v912_v43 = vld [vmem:[%s1185_s1 + $0x110] sm:$0xff]   ;;  %v914_v45 = vld [vmem:[%s1185_s1 + $0x118] sm:$0xff]  }
   0xf   :  { %787 = vmatpush3.bf16.msra.mxu0 %v884_v13  ;;  %v915_v46 = vld [vmem:[%s1185_s1 + $0x160] sm:$0xff]   ;;  %v917_v48 = vld [vmem:[%s1185_s1 + $0x168] sm:$0xff]   ;;  %v30_v49 = vld [vmem:[%s1184_s0 + $0x10] sm:$0xff] }
  0x10   :  { %788 = vmatprep.subr.bf16.mxu0 %v887_v16  ;;  %v916_v47 = vld [vmem:[%s1185_s1 + $0x120] sm:$0xff]   ;;  %v723_v50 = vcombine.high %v30_v49, %v30_v49 }
  0x11   :  { %809 = vmatpush3.bf16.msra.mxu1 %v886_v15 }
  0x12   :  { %810 = vmatprep.subr.bf16.mxu1 %v889_v18 }
  0x13   :  { %789 = vmatpush3.bf16.msra.mxu0 %v888_v17 }
  0x14   :  { %790 = vmatprep.subr.bf16.mxu0 %v891_v20 }
  0x15   :  { %811 = vmatpush3.bf16.msra.mxu1 %v890_v19 }
  0x16   :  { %812 = vmatprep.subr.bf16.mxu1 %v893_v22 }
  0x17   :  { %791 = vmatpush3.bf16.msra.mxu0 %v892_v21 }
  0x18   :  { %792 = vmatprep.subr.bf16.mxu0 %v895_v24 }
  0x19   :  { %813 = vmatpush3.bf16.msra.mxu1 %v894_v23 }
  0x1a   :  { %814 = vmatprep.subr.bf16.mxu1 %v897_v26 }
  0x1b   :  { %793 = vmatpush3.bf16.msra.mxu0 %v896_v25 }
  0x1c   :  { %794 = vmatprep.subr.bf16.mxu0 %v899_v28 }
  0x1d   :  { %815 = vmatpush3.bf16.msra.mxu1 %v898_v27 }
  0x1e   :  { %816 = vmatprep.subr.bf16.mxu1 %v901_v30 }
  0x1f   :  { %795 = vmatpush3.bf16.msra.mxu0 %v900_v29 }
  0x20   :  { %824 = vmatprep.subr.bf16.mxu0 %v905_v35 }
  0x21   :  { %817 = vmatpush3.bf16.msra.mxu1 %v904_v34 }
  0x22   :  { %476 = vmatmul.mubr.bf16.vlgmr.msra.gmra.mrb[0].mxu0 %v718_v32 }
  0x23   :  { %825 = vmatpush3.bf16.msra.mxu0 %v908_v39  ;;  %555 = vmatprep.mubr.bf16.mxu0 %v723_v50 }
  0x24   :  { %516 = vmatmul.mubr.bf16.vlgmr.msra.gmra.mrb[0].mxu1 %v720_v37  ;;  %826 = vmatprep.subr.bf16.mxu0 %v909_v40 }
  0x27   :  { %827 = vmatpush3.bf16.msra.mxu0 %v910_v41 }
  0x28   :  { %828 = vmatprep.subr.bf16.mxu0 %v911_v42 }
  0x2b   :  { %829 = vmatpush3.bf16.msra.mxu0 %v912_v43 }
  0x2c   :  { %830 = vmatprep.subr.bf16.mxu0 %v913_v44 }
  0x2f   :  { %831 = vmatpush3.bf16.msra.mxu0 %v914_v45 }
  0x30   :  { %832 = vmatprep.subr.bf16.mxu0 %v915_v46 }
  0x31   :  { %12 = vsyncpa [#allocation3], 0  ;;  %v918_v51 = vld [vmem:[%s1185_s1 + $0x128] sm:$0xff]   ;;  %v919_v52 = vld [vmem:[%s1185_s1 + $0x170] sm:$0xff]   ;;  %v722_v56 = vcombine.low %v30_v49, %v30_v49  ;;  %v953_v58 = vmov 0.0   ;;  %vm588_vm0 = vcmask 1043456  }
  0x32   :  { %v920_v53 = vld [vmem:[%s1185_s1 + $0x130] sm:$0xff]   ;;  %v921_v54 = vld [vmem:[%s1185_s1 + $0x178] sm:$0xff]   ;;  %v925_v57 = vld [vmem:[%s1187_s3] sm:$0xff]   ;;  %852 = vmatprep.subr.bf16.mxu1 %v953_v58  ;;  %vm954_vm1 = vmmov 0   ;;  %vm584_vm2 = vcmask 195584   ;;  %vm657_vm3 = vcmask 261120  }
  0x33   :  { %833 = vmatpush3.bf16.msra.mxu0 %v916_v47  ;;  %v922_v55 = vld [vmem:[%s1185_s1 + $0x138] sm:$0xff]   ;;  %853 = vmatpush3.bf16.msra.mxu1 %v925_v57  ;;  %v926_v59 = vld [vmem:[%s1187_s3 + $0x8] ss:$0 sps:$4 sm:$0xff]   ;;  %v717_v62 = vld [vmem:[%s1186_s2] ss:$0 sm:$0xff] }
  0x34   :  { %834 = vmatprep.subr.bf16.mxu0 %v917_v48  ;;  %854 = vmatprep.subr.bf16.mxu1 %v953_v58  ;;  %v590_v60 = vsel %vm588_vm0, %v926_v59, 0  ;;  %v927_v17 = vld [vmem:[%s1189_s5] sm:$0xff]   ;;  %v928_v19 = vld [vmem:[%s1189_s5 + $0x8] sm:$0xff]   ;;  %s955_s5 = smov [#allocation2]  }
  0x35   :  { %856 = vmatprep.mubr.msk.bf16.mxu1 %vm954_vm1, %v953_v58  ;;  %v772_v20 = vld [vmem:[%s1188_s4] ss:$0 sm:$0xff]  ;;  %s709_s21 = sshll.u32 %s955_s5, 4  ;;  %s710_s21 = int_to_ptr.vmem [resolvable:$true] %s709_s21 }
  0x36   :  { %v776_v28 = vld [vmem:[%s1190_s6] ss:$0 sm:$0xff]  ;;  %s929_s4 = scalar_lea.vmem %s710_s21, 128  ;;  %p934_p1 = scmp.lt.s32.totalorder %s710_s21, %s710_s21 }
  0x37   :  { %835 = vmatpush3.bf16.msra.mxu0 %v918_v51  ;;  %855 = vmatpush3.bf16.msra.mxu1 %v590_v60  ;;  %p930_p0 = scmp.ne.s32.totalorder %s710_s21, %s929_s4  ;;  %p935_p2 = scmp.lt.s32.totalorder %s929_s4, %s929_s4 }
  0x38   :  { %836 = vmatprep.subr.bf16.mxu0 %v919_v52  ;;  %860 = vmatprep.subr.bf16.mxu1 %v953_v58 }
  0x39   :  { %p936_p3 = por %p935_p2, %p934_p1 }
  0x3b   :  { %837 = vmatpush3.bf16.msra.mxu0 %v920_v53  ;;  %p937_p4 = pnand %p936_p3, %p930_p0 }
  0x3c   :  { %838 = vmatprep.subr.bf16.mxu0 %v921_v54 }
  0x3f   :  { %839 = vmatpush3.bf16.msra.mxu0 %v922_v55 }
  0x42   :  { %556 = vmatmul.mubr.bf16.vlgmr.msra.gmra.mrb[4].mxu0 %v722_v56 }
  0xf5   :  { %v796_v61 = vpop.f32.mrb[0].mxu0 }
  0xf6   :  { %v797_v63 = vpop.f32.mrb[1].mxu0 }
  0xf7   :  { %v798_v0 = vadd.f32 %v797_v63, %v796_v61  ;;  %v799_v1 = vpop.f32.mrb[2].mxu0  ;;  %v818_v2 = vpop.f32.mrb[0].mxu1 }
  0xf8   :  { %v800_v3 = vpop.f32.mrb[3].mxu0  ;;  %v819_v4 = vpop.f32.mrb[1].mxu1 }
  0xf9   :  { %v478_v5 = vadd.f32 %v798_v0, %v717_v62  ;;  %v820_v6 = vadd.f32 %v819_v4, %v818_v2  ;;  %v821_v7 = vpop.f32.mrb[2].mxu1 }
  0xfa   :  { %v822_v8 = vpop.f32.mrb[3].mxu1 }
  0xfb   :  { %v518_v9 = vadd.f32 %v820_v6, %v478_v5 }
 0x115   :  { %v840_v10 = vpop.f32.mrb[4].mxu0 }
 0x116   :  { %v841_v11 = vpop.f32.mrb[5].mxu0 }
 0x117   :  { %v842_v12 = vadd.f32 %v841_v11, %v840_v10  ;;  %v843_v13 = vpop.f32.mrb[6].mxu0 }
 0x118   :  { %v844_v14 = vpop.f32.mrb[7].mxu0 }
 0x119   :  { %v558_v15 = vadd.f32 %v842_v12, %v518_v9 }
 0x11b   :  { %v563_v16 = vmax.f32 %v558_v15, 0.0 }
 0x11d   :  { %v564_v18 = vpack.c.bf16 %v563_v16, %v563_v16 }
 0x11f   :  { %857 = vmatmul.mubr.msk.bf16.vlgmr.msra.gmra.mrb[4].mxu1 %vm584_vm2, %v564_v18 }
 0x120   :  { %861 = vmatpush3.bf16.msra.mxu1 %v927_v17  ;;  %864 = vmatprep.mubr.msk.bf16.mxu1 %vm954_vm1, %v953_v58 }
 0x121   :  { %862 = vmatprep.subr.bf16.mxu1 %v953_v58 }
 0x124   :  { %863 = vmatpush3.bf16.msra.mxu1 %v928_v19 }
 0x1f2   :  { %v626_v21 = vpop.f32.mrb[4].mxu1 }
 0x1f3   :  { %v627_v22 = vadd.f32 %v772_v20, %v626_v21  ;;  %v858_v23 = vpop.f32.mrb[5].mxu1 }
 0x1f4   :  { %v629_v24 = vpop.f32.mrb[6].mxu1 }
 0x1f5   :  { %v632_v25 = vmax.f32 %v627_v22, 0.0  ;;  %v859_v26 = vpop.f32.mrb[7].mxu1 }
 0x1f7   :  { %v633_v27 = vpack.c.bf16 %v632_v25, %v632_v25 }
 0x1f9   :  { %865 = vmatmul.mubr.msk.bf16.vlgmr.msra.gmra.mrb[8].mxu1 %vm657_vm3, %v633_v27 }
 0x2cc   :  { %v695_v29 = vpop.f32.mrb[8].mxu1 }
 0x2cd   :  { %v696_v30 = vadd.f32 %v776_v28, %v695_v29  ;;  %v866_v31 = vpop.f32.mrb[9].mxu1 }
 0x2ce   :  { %v698_v32 = vpop.f32.mrb[10].mxu1 }
 0x2cf   :  { %v701_v33 = vmax.f32 %v696_v30, 0.0  ;;  %v867_v34 = vpop.f32.mrb[11].mxu1 }
 0x2d1   :  { %702 = vst [vmem:[#allocation2] sm:$0xff] %v701_v33 }
 0x2d2   :  { %940 = shalt.err (!%p937_p4)
}
 0x2d3   :  { %s941_s6 = scalar_lea.hbm %s1191_s7, 128 }
 0x2d4   :  { %p942_p5 = scmp.ne.s32.totalorder %s1191_s7, %s941_s6  ;;  %p945_p6 = scmp.lt.u32.totalorder %s941_s6, %s1191_s7 }
 0x2d6   :  { %p947_p7 = pnand %p945_p6, %p942_p5 }
 0x2d8   :  { %950 = shalt.err (!%p947_p7)
}
 0x2d9   :  { %712 = dma.vmem_to_hbm [thread:$0]  %s710_s21, 128, %s1191_s7, [#allocation3]  }
 0x2da   :  { %951 = dma.done.wait [#allocation3], 128  }
 0x2db   :  { %952 = vsyncadd [#allocation3], 4294967168 }
 0x2dc   :  { %716 = vsyncpa [#allocation3], 1 }

</bundles_post_ra>
